<compile_context>
chip_gen: v6e
topology: v6e:2x2x1
jax: 0.10.0
libtpu: 0.0.40
codegen_flags: <defaults>
</compile_context>

<pallas_src>
import functools

import jax
import jax.numpy as jnp
from jax import lax
from jax.experimental import pallas as pl
from jax.experimental.pallas import tpu as pltpu


def _pool_kernel(neighbor_num, col_bits,
                 vq2_ref, qn_ref, idx_ref, vnorm_ref, vt_ref, feat_ref,
                 out_ref):
    """kNN max-pool for one batch element (grid iterates over batch).

    vq2_ref  : (P, 3)   -2 * sampled (query) vertices
    qn_ref   : (P, 1)   |v_q|^2 per query row
    idx_ref  : (P, 1)   sampled vertex indices (int32) for self-exclusion
    vnorm_ref: (1, N)   |v_j|^2 per key vertex
    vt_ref   : (3, N)   all vertices, transposed (the kNN "keys")
    feat_ref : (N, Cp)  features, channel dim padded to a multiple of 128, f32
    out_ref  : (P, Cp)  max over the k nearest neighbours' features
    """
    k = neighbor_num
    p = qn_ref.shape[0]
    n = vt_ref.shape[1]

    vq2 = vq2_ref[...]                                      # (P, 3)
    vt = vt_ref[...]                                        # (3, N)

    # True squared distance, clamped away from zero/denormals so the monotone
    # float<->int bit trick below is safe:
    #   d[q, j] = |v_j|^2 + |v_q|^2 - 2 <v_q, v_j>
    # K=3 contraction done with VPU broadcast FMAs (frees the MXU slot).
    inner2 = (vq2[:, 0:1] * vt[0:1, :]
              + vq2[:, 1:2] * vt[1:2, :]
              + vq2[:, 2:3] * vt[2:3, :])                   # (P, N)
    d = jnp.maximum(vnorm_ref[...] + qn_ref[...] + inner2, jnp.float32(1e-20))

    # Pack (distance, column) into one f32: high bits = distance bit pattern
    # (monotone for non-negative f32), low `col_bits` bits = column index
    # (unique per column -> min is a first-occurrence argmin).  One XLU
    # lane-reduction per pick instead of two.
    low_mask = (1 << col_bits) - 1
    col = lax.broadcasted_iota(jnp.int32, (p, n), 1)
    packed_bits = jnp.bitwise_or(
        jnp.bitwise_and(pltpu.bitcast(d, jnp.int32), jnp.int32(~low_mask)),
        col)
    packed = pltpu.bitcast(packed_bits, jnp.float32)
    inf = jnp.float32(jnp.inf)
    packed = jnp.where(col == idx_ref[...], inf, packed)    # exclude self

    # k argmin picks: one jnp.min + one compare/select pass over (P, N) each.
    picked = []
    for _ in range(k):
        key = jnp.min(packed, axis=1, keepdims=True)        # (P, 1)
        picked.append(key)
        packed = jnp.where(packed == key, inf, packed)      # mask this pick

    # Batched gather: one (k*P, N) @ (N, Cp) MXU matmul instead of k skinny
    # (P, N) @ (N, Cp) dots; precision HIGHEST keeps the f32 gather exact.
    cols = jnp.bitwise_and(
        pltpu.bitcast(jnp.concatenate(picked, axis=0), jnp.int32),
        jnp.int32(low_mask))                                 # (k*P, 1)
    col_kp = lax.broadcasted_iota(jnp.int32, (k * p, n), 1)
    onehot = (col_kp == cols).astype(jnp.float32)            # (k*P, N)
    gathered = jnp.dot(onehot, feat_ref[...],
                       preferred_element_type=jnp.float32,
                       precision=lax.Precision.HIGHEST)      # (k*P, Cp)

    pooled = gathered[0:p, :]
    for j in range(1, k):
        pooled = jnp.maximum(pooled, gathered[j * p:(j + 1) * p, :])
    out_ref[...] = pooled.astype(out_ref.dtype)


def _round_up(x, m):
    return (x + m - 1) // m * m


def _vmem_limit_bytes(block_bytes, temp_bytes):
    """Generation-aware VMEM cap (never request the whole physical VMEM)."""
    try:
        phys = int(pltpu.get_tpu_info().vmem_capacity_bytes)
    except Exception:
        phys = 64 * 2**20
    cap = 52 * 2**20 if phys <= 64 * 2**20 else 104 * 2**20   # v7x vs v5e/v6e
    need = 2 * block_bytes + temp_bytes + (1 << 20)
    return int(min(cap, max(16 * 2**20, need)))


def pool_layer_forward(vertices, feature_map, key, *, pooling_rate=4,
                       neighbor_num=4):
    bs, n, _ = vertices.shape
    c = feature_map.shape[-1]
    pool_num = n // pooling_rate
    assert 1 <= neighbor_num <= n - 1, "need neighbor_num + 1 <= vertice_num"
    assert n <= (1 << 20), "column-index packing assumes vertice_num <= 2^20"
    col_bits = max(1, (n - 1).bit_length())

    # torch.randperm(vertice_num)[:pool_num] -- same sample for every batch.
    sample_idx = jax.random.permutation(key, n)[:pool_num]
    vertices_pool = jnp.take(vertices, sample_idx, axis=1)            # (bs, P, 3)

    vert_f32 = vertices.astype(jnp.float32)
    vq = jnp.take(vert_f32, sample_idx, axis=1)                       # (bs, P, 3)
    vq2 = -2.0 * vq                                                   # fold -2 once
    qn = jnp.sum(vq * vq, axis=-1, keepdims=True)                     # (bs, P, 1)
    vnorm = jnp.sum(vert_f32 * vert_f32, axis=-1)[:, None, :]         # (bs, 1, N)
    vert_t = jnp.swapaxes(vert_f32, 1, 2)                             # (bs, 3, N)
    idx_i = sample_idx.astype(jnp.int32).reshape(pool_num, 1)         # (P, 1)

    # Lane-dense channel dim (unmasked stores, >=128-wide MXU output).
    c_pad = _round_up(max(c, 1), 128)
    feat_f32 = feature_map.astype(jnp.float32)
    if c_pad != c:
        feat_f32 = jnp.pad(feat_f32, ((0, 0), (0, 0), (0, c_pad - c)))

    # Advisory cost / VMEM budgeting.
    flops = int(bs * (2 * neighbor_num * pool_num * n * c_pad
                      + 12 * pool_num * n))
    bytes_accessed = int(4 * bs * (4 * pool_num + 4 * n + n * c_pad
                                   + pool_num * c_pad) + 4 * pool_num)
    block_bytes = 4 * (4 * pool_num + 4 * n + n * c_pad + pool_num * c_pad)
    temp_bytes = 4 * (3 * pool_num * n
                      + (neighbor_num + 1) * pool_num * n
                      + 2 * neighbor_num * pool_num * c_pad)

    kernel = functools.partial(_pool_kernel, neighbor_num, col_bits)
    sq = pl.Squeezed()

    pooled_full = pl.pallas_call(
        kernel,
        out_shape=jax.ShapeDtypeStruct((bs, pool_num, c_pad), jnp.float32),
        grid=(bs,),
        in_specs=[
            pl.BlockSpec((sq, pool_num, 3), lambda b: (b, 0, 0)),   # -2*queries
            pl.BlockSpec((sq, pool_num, 1), lambda b: (b, 0, 0)),   # |v_q|^2
            pl.BlockSpec((pool_num, 1), lambda b: (0, 0)),          # sample idx
            pl.BlockSpec((sq, 1, n), lambda b: (b, 0, 0)),          # |v_j|^2
            pl.BlockSpec((sq, 3, n), lambda b: (b, 0, 0)),          # vertices^T
            pl.BlockSpec((sq, n, c_pad), lambda b: (b, 0, 0)),      # features
        ],
        out_specs=pl.BlockSpec((sq, pool_num, c_pad), lambda b: (b, 0, 0)),
        compiler_params=pltpu.CompilerParams(
            dimension_semantics=("parallel",),
            vmem_limit_bytes=_vmem_limit_bytes(block_bytes, temp_bytes)),
        cost_estimate=pl.CostEstimate(
            flops=flops, transcendentals=0, bytes_accessed=bytes_accessed),
    )(vq2, qn, idx_i, vnorm, vert_t, feat_f32)

    feature_map_pool = pooled_full[:, :, :c].astype(feature_map.dtype)
    return vertices_pool, feature_map_pool


def _pool_ref(vertices, feature_map, sample_idx, neighbor_num):
    """Pure-JAX reference (same self-exclusion semantics as the kernel)."""
    bs, n, _ = vertices.shape
    vq = vertices[:, sample_idx, :]                                   # (bs, P, 3)
    vt = jnp.swapaxes(vertices, 1, 2)                                 # (bs, 3, N)
    qsq = jnp.sum(vt * vt, axis=1, keepdims=True)                     # (bs, 1, N)
    inner = jnp.einsum("bpd,bdn->bpn", vq, vt)
    dist = qsq - 2.0 * inner                                          # (bs, P, N)
    self_mask = jnp.arange(n)[None, None, :] == sample_idx[None, :, None]
    dist = jnp.where(self_mask, jnp.float32(1e30), dist)
    idx = jnp.argsort(dist, axis=-1)[:, :, :neighbor_num]             # (bs, P, k)
    nb = jax.vmap(lambda f, i: f[i])(feature_map, idx)                # (bs, P, k, C)
    return nb.max(axis=2)


if __name__ == "__main__":
    bs, N, C = 2, 64, 16
    pooling_rate, neighbor_num = 4, 4

    key = jax.random.PRNGKey(0)
    kv, kf, ks = jax.random.split(key, 3)
    vertices = jax.random.normal(kv, (bs, N, 3), jnp.float32)
    feature_map = jax.random.normal(kf, (bs, N, C), jnp.float32)

    v_pool, f_pool = pool_layer_forward(vertices, feature_map, ks,
                                        pooling_rate=pooling_rate,
                                        neighbor_num=neighbor_num)
    v_pool, f_pool = jax.block_until_ready((v_pool, f_pool))

    P = N // pooling_rate
    assert v_pool.shape == (bs, P, 3)
    assert f_pool.shape == (bs, P, C)
    assert bool(jnp.all(jnp.isfinite(f_pool)))

    # correctness check vs pure-JAX reference (same sampled indices).
    sample_idx = jax.random.permutation(ks, N)[:P]
    ref = _pool_ref(vertices, feature_map, sample_idx, neighbor_num)
    assert bool(jnp.allclose(f_pool, ref, rtol=1e-5, atol=1e-5))
    assert bool(jnp.allclose(v_pool, vertices[:, sample_idx, :]))

    print("KERNEL_OK")
</pallas_src>

<mosaic_0001>
module attributes {stable_mosaic.version = 11 : i64} {
  func.func @_pool_kernel(%arg0: i32, %arg1: memref<1x16x3xf32, #tpu.memory_space<vmem>>, %arg2: memref<1x16x1xf32, #tpu.memory_space<vmem>>, %arg3: memref<16x1xi32, #tpu.memory_space<vmem>>, %arg4: memref<1x1x64xf32, #tpu.memory_space<vmem>>, %arg5: memref<1x3x64xf32, #tpu.memory_space<vmem>>, %arg6: memref<1x64x128xf32, #tpu.memory_space<vmem>>, %arg7: memref<1x16x128xf32, #tpu.memory_space<vmem>>) attributes {dimension_semantics = [#tpu.dimension_semantics<parallel>], iteration_bounds = array<i64: 2>, scalar_prefetch = 0 : i64, scratch_operands = 0 : i64, tpu.core_type = #tpu.core_type<tc>, window_params = [{transform_indices = @transform_0, window_bounds = array<i64: 1, 16, 3>}, {transform_indices = @transform_1, window_bounds = array<i64: 1, 16, 1>}, {pipeline_mode = #tpu.pipeline_mode<synchronous>, transform_indices = @transform_2, window_bounds = array<i64: 16, 1>}, {transform_indices = @transform_3, window_bounds = array<i64: 1, 1, 64>}, {transform_indices = @transform_4, window_bounds = array<i64: 1, 3, 64>}, {transform_indices = @transform_5, window_bounds = array<i64: 1, 64, 128>}, {transform_indices = @transform_6, window_bounds = array<i64: 1, 16, 128>}]} {
    %c0 = arith.constant 0 : index
    %c0_0 = arith.constant 0 : index
    %c0_1 = arith.constant 0 : index
    %0 = vector.load %arg1[%c0, %c0_0, %c0_1] : memref<1x16x3xf32, #tpu.memory_space<vmem>>, vector<1x16x3xf32>
    %1 = vector.shape_cast %0 : vector<1x16x3xf32> to vector<16x3xf32>
    %c0_2 = arith.constant 0 : index
    %c0_3 = arith.constant 0 : index
    %c0_4 = arith.constant 0 : index
    %2 = vector.load %arg5[%c0_2, %c0_3, %c0_4] : memref<1x3x64xf32, #tpu.memory_space<vmem>>, vector<1x3x64xf32>
    %3 = vector.shape_cast %2 : vector<1x3x64xf32> to vector<3x64xf32>
    %4 = vector.extract_strided_slice %1 {offsets = [0, 0], sizes = [16, 1], strides = [1, 1]} : vector<16x3xf32> to vector<16x1xf32>
    %5 = vector.extract_strided_slice %3 {offsets = [0, 0], sizes = [1, 64], strides = [1, 1]} : vector<3x64xf32> to vector<1x64xf32>
    %6 = vector.broadcast %4 : vector<16x1xf32> to vector<16x64xf32>
    %7 = vector.broadcast %5 : vector<1x64xf32> to vector<16x64xf32>
    %8 = arith.mulf %6, %7 : vector<16x64xf32>
    %9 = vector.extract_strided_slice %1 {offsets = [0, 1], sizes = [16, 1], strides = [1, 1]} : vector<16x3xf32> to vector<16x1xf32>
    %10 = vector.extract_strided_slice %3 {offsets = [1, 0], sizes = [1, 64], strides = [1, 1]} : vector<3x64xf32> to vector<1x64xf32>
    %11 = vector.broadcast %9 : vector<16x1xf32> to vector<16x64xf32>
    %12 = vector.broadcast %10 : vector<1x64xf32> to vector<16x64xf32>
    %13 = arith.mulf %11, %12 : vector<16x64xf32>
    %14 = arith.addf %8, %13 : vector<16x64xf32>
    %15 = vector.extract_strided_slice %1 {offsets = [0, 2], sizes = [16, 1], strides = [1, 1]} : vector<16x3xf32> to vector<16x1xf32>
    %16 = vector.extract_strided_slice %3 {offsets = [2, 0], sizes = [1, 64], strides = [1, 1]} : vector<3x64xf32> to vector<1x64xf32>
    %17 = vector.broadcast %15 : vector<16x1xf32> to vector<16x64xf32>
    %18 = vector.broadcast %16 : vector<1x64xf32> to vector<16x64xf32>
    %19 = arith.mulf %17, %18 : vector<16x64xf32>
    %20 = arith.addf %14, %19 : vector<16x64xf32>
    %c0_5 = arith.constant 0 : index
    %c0_6 = arith.constant 0 : index
    %c0_7 = arith.constant 0 : index
    %21 = vector.load %arg4[%c0_5, %c0_6, %c0_7] : memref<1x1x64xf32, #tpu.memory_space<vmem>>, vector<1x1x64xf32>
    %22 = vector.shape_cast %21 : vector<1x1x64xf32> to vector<1x64xf32>
    %c0_8 = arith.constant 0 : index
    %c0_9 = arith.constant 0 : index
    %c0_10 = arith.constant 0 : index
    %23 = vector.load %arg2[%c0_8, %c0_9, %c0_10] : memref<1x16x1xf32, #tpu.memory_space<vmem>>, vector<1x16x1xf32>
    %24 = vector.shape_cast %23 : vector<1x16x1xf32> to vector<16x1xf32>
    %25 = vector.broadcast %22 : vector<1x64xf32> to vector<16x64xf32>
    %26 = vector.broadcast %24 : vector<16x1xf32> to vector<16x64xf32>
    %27 = arith.addf %25, %26 : vector<16x64xf32>
    %28 = arith.addf %27, %20 : vector<16x64xf32>
    %cst = arith.constant 9.99999968E-21 : f32
    %29 = vector.broadcast %cst : f32 to vector<16x64xf32>
    %30 = arith.maximumf %28, %29 : vector<16x64xf32>
    %31 = tpu.iota {dimensions = array<i32: 1>} : vector<16x64xi32>
    %32 = tpu.bitcast %30 : vector<16x64xf32> -> vector<16x64xi32>
    %c-64_i32 = arith.constant -64 : i32
    %33 = vector.broadcast %c-64_i32 : i32 to vector<16x64xi32>
    %34 = arith.andi %32, %33 : vector<16x64xi32>
    %35 = arith.ori %34, %31 : vector<16x64xi32>
    %36 = tpu.bitcast %35 : vector<16x64xi32> -> vector<16x64xf32>
    %c0_11 = arith.constant 0 : index
    %c0_12 = arith.constant 0 : index
    %37 = vector.load %arg3[%c0_11, %c0_12] : memref<16x1xi32, #tpu.memory_space<vmem>>, vector<16x1xi32>
    %38 = vector.broadcast %37 : vector<16x1xi32> to vector<16x64xi32>
    %39 = arith.cmpi eq, %31, %38 : vector<16x64xi32>
    %cst_13 = arith.constant 0x7F800000 : f32
    %40 = vector.broadcast %cst_13 : f32 to vector<16x64xf32>
    %41 = arith.select %39, %40, %36 : vector<16x64xi1>, vector<16x64xf32>
    %cst_14 = arith.constant dense<0x7F800000> : vector<16xf32>
    %42 = vector.multi_reduction <minimumf>, %41, %cst_14 [1] : vector<16x64xf32> to vector<16xf32>
    %43 = vector.shape_cast %42 : vector<16xf32> to vector<16x1xf32>
    %44 = vector.broadcast %43 : vector<16x1xf32> to vector<16x64xf32>
    %45 = arith.cmpf oeq, %41, %44 : vector<16x64xf32>
    %cst_15 = arith.constant 0x7F800000 : f32
    %46 = vector.broadcast %cst_15 : f32 to vector<16x64xf32>
    %47 = arith.select %45, %46, %41 : vector<16x64xi1>, vector<16x64xf32>
    %cst_16 = arith.constant dense<0x7F800000> : vector<16xf32>
    %48 = vector.multi_reduction <minimumf>, %47, %cst_16 [1] : vector<16x64xf32> to vector<16xf32>
    %49 = vector.shape_cast %48 : vector<16xf32> to vector<16x1xf32>
    %50 = vector.broadcast %49 : vector<16x1xf32> to vector<16x64xf32>
    %51 = arith.cmpf oeq, %47, %50 : vector<16x64xf32>
    %cst_17 = arith.constant 0x7F800000 : f32
    %52 = vector.broadcast %cst_17 : f32 to vector<16x64xf32>
    %53 = arith.select %51, %52, %47 : vector<16x64xi1>, vector<16x64xf32>
    %cst_18 = arith.constant dense<0x7F800000> : vector<16xf32>
    %54 = vector.multi_reduction <minimumf>, %53, %cst_18 [1] : vector<16x64xf32> to vector<16xf32>
    %55 = vector.shape_cast %54 : vector<16xf32> to vector<16x1xf32>
    %56 = vector.broadcast %55 : vector<16x1xf32> to vector<16x64xf32>
    %57 = arith.cmpf oeq, %53, %56 : vector<16x64xf32>
    %cst_19 = arith.constant 0x7F800000 : f32
    %58 = vector.broadcast %cst_19 : f32 to vector<16x64xf32>
    %59 = arith.select %57, %58, %53 : vector<16x64xi1>, vector<16x64xf32>
    %cst_20 = arith.constant dense<0x7F800000> : vector<16xf32>
    %60 = vector.multi_reduction <minimumf>, %59, %cst_20 [1] : vector<16x64xf32> to vector<16xf32>
    %61 = vector.shape_cast %60 : vector<16xf32> to vector<16x1xf32>
    %62 = tpu.concatenate %43, %49, %55, %61 in 0 : vector<16x1xf32>, vector<16x1xf32>, vector<16x1xf32>, vector<16x1xf32> -> vector<64x1xf32>
    %63 = tpu.bitcast %62 : vector<64x1xf32> -> vector<64x1xi32>
    %c63_i32 = arith.constant 63 : i32
    %64 = vector.broadcast %c63_i32 : i32 to vector<64x1xi32>
    %65 = arith.andi %63, %64 : vector<64x1xi32>
    %66 = tpu.iota {dimensions = array<i32: 1>} : vector<64x64xi32>
    %67 = vector.broadcast %65 : vector<64x1xi32> to vector<64x64xi32>
    %68 = arith.cmpi eq, %66, %67 : vector<64x64xi32>
    %69 = arith.extui %68 : vector<64x64xi1> to vector<64x64xi32>
    %70 = arith.sitofp %69 : vector<64x64xi32> to vector<64x64xf32>
    %c0_21 = arith.constant 0 : index
    %c0_22 = arith.constant 0 : index
    %c0_23 = arith.constant 0 : index
    %71 = vector.load %arg6[%c0_21, %c0_22, %c0_23] : memref<1x64x128xf32, #tpu.memory_space<vmem>>, vector<1x64x128xf32>
    %72 = vector.shape_cast %71 : vector<1x64x128xf32> to vector<64x128xf32>
    %cst_24 = arith.constant dense<0.000000e+00> : vector<64x128xf32>
    %73 = tpu.matmul %70, %72, %cst_24 {dimension_numbers = #tpu.dot_dimension_numbers<[1], [0], [0], [1], [0, 0, 1, 1], [], []>, precision = #tpu.contract_precision<fp32>} : vector<64x64xf32>, vector<64x128xf32>, vector<64x128xf32> -> vector<64x128xf32>
    %74 = vector.extract_strided_slice %73 {offsets = [0, 0], sizes = [16, 128], strides = [1, 1]} : vector<64x128xf32> to vector<16x128xf32>
    %75 = vector.extract_strided_slice %73 {offsets = [16, 0], sizes = [16, 128], strides = [1, 1]} : vector<64x128xf32> to vector<16x128xf32>
    %76 = arith.maximumf %74, %75 : vector<16x128xf32>
    %77 = vector.extract_strided_slice %73 {offsets = [32, 0], sizes = [16, 128], strides = [1, 1]} : vector<64x128xf32> to vector<16x128xf32>
    %78 = arith.maximumf %76, %77 : vector<16x128xf32>
    %79 = vector.extract_strided_slice %73 {offsets = [48, 0], sizes = [16, 128], strides = [1, 1]} : vector<64x128xf32> to vector<16x128xf32>
    %80 = arith.maximumf %78, %79 : vector<16x128xf32>
    %c0_25 = arith.constant 0 : index
    %c0_26 = arith.constant 0 : index
    %c0_27 = arith.constant 0 : index
    %81 = vector.load %arg7[%c0_25, %c0_26, %c0_27] : memref<1x16x128xf32, #tpu.memory_space<vmem>>, vector<1x16x128xf32>
    %82 = vector.shape_cast %81 : vector<1x16x128xf32> to vector<16x128xf32>
    %83 = vector.shape_cast %80 : vector<16x128xf32> to vector<1x16x128xf32>
    tpu.vector_store %arg7[%c0_25, %c0_26, %c0_27], %83 {strides = array<i32>} : memref<1x16x128xf32, #tpu.memory_space<vmem>>, vector<1x16x128xf32>,
    return
  }
  func.func @transform_0(%arg0: i32) -> (i32, i32, i32) {
    %c0_i32 = arith.constant 0 : i32
    %c0_i32_0 = arith.constant 0 : i32
    %c0_i32_1 = arith.constant 0 : i32
    return %arg0, %c0_i32, %c0_i32_0 : i32, i32, i32
  }
  func.func @transform_1(%arg0: i32) -> (i32, i32, i32) {
    %c0_i32 = arith.constant 0 : i32
    %c0_i32_0 = arith.constant 0 : i32
    %c0_i32_1 = arith.constant 0 : i32
    return %arg0, %c0_i32, %c0_i32_0 : i32, i32, i32
  }
  func.func @transform_2(%arg0: i32) -> (i32, i32) {
    %c0_i32 = arith.constant 0 : i32
    %c0_i32_0 = arith.constant 0 : i32
    %c0_i32_1 = arith.constant 0 : i32
    return %c0_i32, %c0_i32_0 : i32, i32
  }
  func.func @transform_3(%arg0: i32) -> (i32, i32, i32) {
    %c0_i32 = arith.constant 0 : i32
    %c0_i32_0 = arith.constant 0 : i32
    %c0_i32_1 = arith.constant 0 : i32
    return %arg0, %c0_i32, %c0_i32_0 : i32, i32, i32
  }
  func.func @transform_4(%arg0: i32) -> (i32, i32, i32) {
    %c0_i32 = arith.constant 0 : i32
    %c0_i32_0 = arith.constant 0 : i32
    %c0_i32_1 = arith.constant 0 : i32
    return %arg0, %c0_i32, %c0_i32_0 : i32, i32, i32
  }
  func.func @transform_5(%arg0: i32) -> (i32, i32, i32) {
    %c0_i32 = arith.constant 0 : i32
    %c0_i32_0 = arith.constant 0 : i32
    %c0_i32_1 = arith.constant 0 : i32
    return %arg0, %c0_i32, %c0_i32_0 : i32, i32, i32
  }
  func.func @transform_6(%arg0: i32) -> (i32, i32, i32) {
    %c0_i32 = arith.constant 0 : i32
    %c0_i32_0 = arith.constant 0 : i32
    %c0_i32_1 = arith.constant 0 : i32
    return %arg0, %c0_i32, %c0_i32_0 : i32, i32, i32
  }
}

</mosaic_0001>

<bundles_post_ra>
// kernel: tpu_custom_call.1
= control target key start
LH: loop header
LB: loop body
LE: loop exit
PB: predicated region body
PF: predicated region fallthrough
CT: control target
= control target key end

     0   :  { %11 = vsyncpa [#allocation3], 0  ;;  %s2609_s0 = inlined_call_operand.vmem [shape: f32[2,16,3], index: 0, kind: input, shape index: {}]   ;;  %s2610_s1 = inlined_call_operand.vmem [shape: f32[2,16,1], index: 1, kind: input, shape index: {}]   ;;  %s2611_s2 = inlined_call_operand.vmem [shape: s32[16,1], index: 2, kind: input, shape index: {}]   ;;  %s2612_s3 = inlined_call_operand.vmem [shape: f32[2,1,64], index: 3, kind: input, shape index: {}]   ;;  %s2613_s4 = inlined_call_operand.vmem [shape: f32[2,3,64], index: 4, kind: input, shape index: {}]   ;;  %s2614_s5 = inlined_call_operand.hbm [shape: f32[2,64,128], index: 5, kind: input, shape index: {}]   ;;  %s2615_s6 = inlined_call_operand.hbm [shape: f32[2,16,128], index: 6, kind: output, shape index: {}]  }
   0x1   :  { %13 = vsyncpa [#allocation3 + $0x1], 0 }
   0x2   :  { %14 = vsyncpa [#allocation4], 0 }
   0x3   :  { %16 = vsyncpa [#allocation4 + $0x1], 0  ;;  %s2071_s21 = smov 0   ;;  %s2073_s22 = smov 0  }
   0x4   :  { %s2075_s23 = smov 0   ;;  %s2077_s24 = smov 0  }
   0x5 LB: > { %s2092_s25 = sadd.s32 4294967295, %s2024_s24   ;;  %s1550_s26 = sadd.s32 4294967294, %s2024_s24   ;;  %s2024_s24 = sphi %s2077_s24, %s2630_s24   ;;  %s2020_s23 = sphi %s2075_s23, %s2629_s23   ;;  %s2016_s22 = sphi %s2073_s22, %s2628_s22   ;;  %s2012_s21 = sphi %s2071_s21, %s2627_s21  }
   0x6   : > { %s2096_s27 = sadd.s32 1, %s2024_s24   ;;  %s154_s28 = sadd.s32 1, %s2020_s23 }
   0x7   : > { %s151_s29 = ssub.s32 %s2024_s24, %s2096_s27  ;;  %p161_p0 = scmp.ne.s32.totalorder %s2020_s23, %s2016_s22 }
   0x8   : > { %p152_p1 = scmp.eq.s32.totalorder %s151_s29, 0  ;;  %p162_p2 = scmp.eq.s32.totalorder %s2024_s24, 0 }
   0x9   : > { %p167_p3 = scmp.ne.s32.totalorder %s2016_s22, %s2012_s21  ;;  %p168_p4 = scmp.eq.s32.totalorder %s2092_s25, 0 }
   0xa   : > { %s2108_s30 = scalar_select %p152_p1, %s2020_s23, %s154_s28  }
   0xb   : > { %p2110_p5 = por %p162_p2, %p161_p0  ;;  %p2114_p6 = por %p168_p4, %p167_p3 }
   0xc   : > { %p191_p7 = scmp.eq.s32.totalorder %s2092_s25, 1  ;;  %p197_p8 = scmp.eq.s32.totalorder %s1550_s26, 1 }
   0xd   : > { %s2619_s8 = scalar_select %p2114_p6, 1, 0 }
   0xe   : > { %p1882_p10 = scmp.lt.s32.totalorder %s2024_s24, 2  ;;  %p2121_p11 = por %p191_p7, %p161_p0 }
   0xf   : > { %p2125_p12 = por %p197_p8, %p167_p3  ;;  %s249_s11 = sand.u32 1, %s2020_s23  }
  0x10   : > { %s2620_s9 = scalar_select %p2121_p11, 1, 0 }
  0x11   : > { %s2621_s10 = scalar_select %p2125_p12, 1, 0 }
  0x12   : > { %s1602_s12 = sshll.u32 %s2024_s24, 10  ;;  %s1553_s13 = sshll.u32 %s249_s11, 6 }
  0x13   : > { %s2134_s16 = scalar_lea.hbm %s2614_s5, %s1602_s12  ;;  %s253_s17 = scalar_lea.vmem [#allocation2], %s1553_s13 }
  0x14   : > { %s260_s18 = sshll.u32 %s253_s17, 4  ;;  %p2138_p13 = pnand %p1882_p10, %p2110_p5  ;;  %s2142_s18 = int_to_ptr.vmem [resolvable:$true] %s260_s18 }
  0x15   : > { %s2144_s20 = scalar_lea.sflag [#allocation3], %s249_s11  ;;  %s1932_s26 = scalar_lea.hbm %s2134_s16, 1024 }
  0x16   : > { %p1933_p0 = scmp.ne.s32.totalorder %s2134_s16, %s1932_s26  ;;  %p1934_p1 = pneg %p2138_p13 }
  0x17   : > { %s1937_s12 = scalar_lea.hbm %s2614_s5, 2048  ;;  %p1938_p4 = scmp.lt.s32.totalorder %s2134_s16, %s2614_s5 }
  0x18   : > { %p1935_p2 = pnand %p1934_p1, %p1933_p0  ;;  %p1939_p5 = scmp.lt.s32.totalorder %s1937_s12, %s1932_s26 }
  0x1a   : > { %p1936_p3 = pneg %p1935_p2  ;;  %p1940_p7 = por %p1939_p5, %p1938_p4 }
  0x1c   : > { %p1941_p8 = pnand %p1940_p7, %p1936_p3 }
  0x1e   : > { %1944 = shalt.err (!%p1941_p8)
}
  0x1f   : > { %s1945_s11 = scalar_lea.vmem %s2142_s18, 1024  ;;  %s2026_s14 = smov [#allocation2]  }
  0x20   : > { %p1946_p10 = scmp.ne.s32.totalorder %s2142_s18, %s1945_s11  ;;  %s1950_s15 = sshll.u32 %s2026_s14, 4  ;;  %s1951_s15 = int_to_ptr.vmem [resolvable:$false] %s1950_s15 }
  0x21   : > { %s1952_s17 = scalar_lea.vmem %s1951_s15, 2048  ;;  %p1953_p2 = scmp.lt.s32.totalorder %s2142_s18, %s1951_s15 }
  0x22   : > { %p1948_p9 = pnand %p1946_p10, %p1934_p1  ;;  %p1954_p12 = scmp.lt.s32.totalorder %s1952_s17, %s1945_s11 }
  0x24   : > { %p1949_p0 = pneg %p1948_p9  ;;  %p1955_p11 = por %p1954_p12, %p1953_p2 }
  0x26   : > { %p1956_p6 = pnand %p1955_p11, %p1949_p0 }
  0x28   : > { %1959 = shalt.err (!%p1956_p6)
}
  0x29   : > { %s2027_s26 = smov 128   ;;  %s2028_s28 = smov 8  }
  0x2a   : > { %1877 = dma.hbm_to_vmem [thread:$0]  (!%p2138_p13), %s2134_s16, 1024, %s2142_s18, %s2144_s20, %s2027_s26, %s2027_s26, %s2028_s28  }
  0x2b   : > { %p1556_p9 = scmp.ge.s32.totalorder %s2024_s24, 1  ;;  %p268_p1 = scmp.lt.s32.totalorder %s2024_s24, 3 }
  0x2d   : > { %p269_p3 = pnand %p1556_p9, %p268_p1 }
  0x2e   : > { %s2168_s29 = sand.u32 (!%p269_p3), 1, %s2016_s22   ;;  %p2623_p6 = scmp.ne.s32.totalorder (!%p269_p3), %s2619_s8, 0 }
  0x2f   : > { %272 = sbr.rel (%p269_p3) target bundleno = 1166 (0x48e), region = 44  ;;  %s1557_s12 = sshll.u32 (!%p269_p3), %s2168_s29, 6 }
  0x30   : > { %s275_s7 = scalar_lea.sflag (!%p269_p3), [#allocation3], %s2168_s29  ;;  %s2172_s13 = scalar_lea.vmem (!%p269_p3), [#allocation2], %s1557_s12 }
  0x34   : > { %2003 = dma.done.wait (%p2623_p6), %s275_s7, 1024  }
  0x35   : > { %2005 = vsyncadd (%p2623_p6), %s275_s7, 4294966272  ;;  %p324_p11 = scmp.lt.s32.totalorder %s2092_s25, 1  ;;  %v2029_v0 = vmov 0   ;;  %v2030_v3 = vmov 1   ;;  %v2031_v4 = vmov 2   ;;  %v427_v6 = vld [vmem:[%s2611_s2] sm:$0xff]  ;;  %v354_v9 = vlaneseq }
  0x36   : > { %1926 = vset.pattern.permute.xlu1 %v2029_v0  ;;  %1924 = vset.pattern.permute.xlu0 %v2029_v0  ;;  %v428_v8 = vld [vmem:[%s2611_s2 + $0x8] sm:$0xff]  ;;  %vm439_vm1 = vcmask 523264   ;;  %s1605_s17 = sshll.u32 %s2092_s25, 8  ;;  %p2624_p13 = scmp.ne.s32.totalorder %s2620_s9, 0 }
  0x37   : > { %s2180_s16 = scalar_select %p324_p11, %s2092_s25, 1  ;;  %v355_v10 = vshrl.u32 %v354_v9, 7  ;;  %v2203_v37 = vand.u32 127, %v354_v9 }
  0x38   : > { %s2566_s12 = scalar_lea.hbm %s2615_s6, %s1605_s17  ;;  %s2033_s25 = smov [#allocation5]  }
  0x39   : > { %s1603_s18 = sshll.u32 %s2180_s16, 4  ;;  %s1563_s7 = sshll.u32 %s2180_s16, 2  ;;  %v356_v13 = vsub.s32 0, %v355_v10  ;;  %v370_v14 = vsub.s32 1, %v355_v10  ;;  %v386_v16 = vsub.s32 2, %v355_v10 }
  0x3a   : > { %s328_s11 = scalar_lea.vmem %s2609_s0, %s1603_s18  ;;  %s333_s15 = scalar_lea.vmem %s2610_s1, %s1603_s18 }
  0x3b   : > { %v342_v1 = vld [vmem:[%s328_s11 + $0x8] sm:$0xff]  ;;  %v341_v2 = vld [vmem:[%s328_s11] sm:$0xff]  ;;  %s340_s20 = scalar_lea.vmem %s2613_s4, %s1563_s7  ;;  %s336_s14 = scalar_lea.vmem %s2612_s3, %s2180_s16 }
  0x3c   : > { %351 = vperm.xlu1 %1926, %v342_v1   ;;  %346 = vperm.xlu0 %1924, %v341_v2   ;;  %v393_v5 = vld [vmem:[%s333_s15] sm:$0xff]  ;;  %v394_v7 = vld [vmem:[%s333_s15 + $0x8] sm:$0xff]  ;;  %s1419_s7 = scalar_lea.sflag [#allocation4], %s2168_s29  ;;  %s1964_s19 = sshll.u32 %s2033_s25, 4  ;;  %s1965_s19 = int_to_ptr.vmem [resolvable:$false] %s1964_s19 }
  0x3d   : > { %v343_v15 = vld [vmem:[%s340_s20] sm:$0x7]  ;;  %s1966_s20 = scalar_lea.vmem %s1965_s19, 512 }
  0x3e   : > { %v357_v19 = vrot.slane %v343_v15, %v356_v13  ;;  %v371_v20 = vrot.slane %v343_v15, %v370_v14  ;;  %v387_v23 = vrot.slane %v343_v15, %v386_v16  ;;  %v1564_v28 = vld [vmem:[%s336_s14] ss:$0 sm:$0xff] }
  0x40   : > { %1927 = vset.pattern.permute.xlu1 %v2030_v3  ;;  %1925 = vset.pattern.permute.xlu0 %v2030_v3  ;;  %v546_v3 = vld [vmem:[%s2172_s13 + $0x30] sm:$0xff] }
  0x41   : > { %365 = vperm.xlu1 %1927, %v342_v1   ;;  %361 = vperm.xlu0 %1925, %v341_v2  }
  0x45   : > { %1928 = vset.pattern.permute.xlu1 %v2031_v4  ;;  %1929 = vset.pattern.permute.xlu0 %v2031_v4  ;;  %v545_v4 = vld [vmem:[%s2172_s13 + $0x28] sm:$0xff] }
  0x46   : > { %377 = vperm.xlu1 %1928, %v341_v2   ;;  %381 = vperm.xlu0 %1929, %v342_v1   ;;  %v547_v2 = vld [vmem:[%s2172_s13 + $0x38] sm:$0xff] }
  0x4a   : > { %1930 = vset.pattern.permute.xlu1 %v2029_v0  ;;  %1931 = vset.pattern.permute.xlu0 %v2029_v0 }
  0x4b   : > { %403 = vperm.xlu1 %1930, %v393_v5   ;;  %430 = vperm.xlu0 %1931, %v427_v6   ;;  %v2230_v5 = vand.u32 4294901760, %v547_v2  ;;  %v2232_v6 = vand.u32 4294901760, %v546_v3 }
  0x4d   : > { %v2240_v9 = vsub.f32 %v546_v3, %v2232_v6  ;;  %1702 = vmatprep.subr.mxu0 %v2230_v5 }
  0x4e   : > { %1703 = vmatpush3.msra.mxu0 %v2230_v5 }
  0x4f   : > { %408 = vperm.xlu1 %1930, %v394_v7   ;;  %v2234_v7 = vand.u32 4294901760, %v545_v4  ;;  %1704 = vmatprep.subr.mxu0 %v2232_v6 }
  0x50   : > { %1705 = vmatpush3.msra.mxu0 %v2232_v6 }
  0x51   : > { %v2243_v10 = vsub.f32 %v545_v4, %v2234_v7  ;;  %1706 = vmatprep.subr.mxu0 %v2234_v7 }
  0x52   : > { %1707 = vmatpush3.msra.mxu0 %v2234_v7 }
  0x53   : > { %433 = vperm.xlu1 %1930, %v428_v8   ;;  %v2237_v8 = vsub.f32 %v547_v2, %v2230_v5  ;;  %v2254_v13 = vand.u32 4294901760, %v2243_v10 }
  0x55   : > { %v759_v16 = vsub.f32 %v2243_v10, %v2254_v13 }
  0xb7   : > { %v352_v11 = vpop.permute.xlu1 %351  ;;  %v347_v12 = vpop.permute.xlu0 %346 }
  0xb8   : > { %v358_v21 = vmul.f32 %v357_v19, %v347_v12  ;;  %v359_v31 = vmul.f32 %v357_v19, %v352_v11  ;;  %v2248_v11 = vand.u32 4294901760, %v2237_v8  ;;  %v2251_v12 = vand.u32 4294901760, %v2240_v9 }
  0xb9   : > { %v760_v19 = vand.u32 4294901760, %v759_v16 }
  0xba   : > { %v745_v14 = vsub.f32 %v2237_v8, %v2248_v11  ;;  %v752_v15 = vsub.f32 %v2240_v9, %v2251_v12 }
  0xbc   : > { %v366_v17 = vpop.permute.xlu1 %365  ;;  %v362_v18 = vpop.permute.xlu0 %361 }
  0xbd   : > { %v372_v22 = vmul.f32 %v371_v20, %v362_v18  ;;  %v373_v29 = vmul.f32 %v371_v20, %v366_v17  ;;  %v746_v17 = vand.u32 4294901760, %v745_v14  ;;  %v753_v18 = vand.u32 4294901760, %v752_v15 }
  0xbf   : > { %v374_v25 = vadd.f32 %v372_v22, %v358_v21  ;;  %v375_v35 = vadd.f32 %v373_v29, %v359_v31  ;;  %1730 = vmatprep.subr.mxu1 %v746_v17  ;;  %v542_v31 = vld [vmem:[%s2172_s13 + $0x10] sm:$0xff] }
  0xc0   : > { %1731 = vmatpush3.msra.mxu1 %v746_v17 }
  0xc1   : > { %v378_v24 = vpop.permute.xlu1 %377  ;;  %v382_v27 = vpop.permute.xlu0 %381  ;;  %1732 = vmatprep.subr.mxu1 %v753_v18 }
  0xc2   : > { %v388_v26 = vmul.f32 %v387_v23, %v378_v24  ;;  %v389_v33 = vmul.f32 %v387_v23, %v382_v27  ;;  %1733 = vmatpush3.msra.mxu1 %v753_v18  ;;  %v544_v24 = vld [vmem:[%s2172_s13 + $0x20] sm:$0xff]  ;;  %v543_v27 = vld [vmem:[%s2172_s13 + $0x18] sm:$0xff] }
  0xc3   : > { %1734 = vmatprep.subr.mxu1 %v760_v19 }
  0xc4   : > { %v390_v32 = vadd.f32 %v388_v26, %v374_v25  ;;  %v391_v39 = vadd.f32 %v389_v33, %v375_v35  ;;  %1735 = vmatpush3.msra.mxu1 %v760_v19  ;;  %v2274_v25 = vand.u32 4294901760, %v544_v24  ;;  %v541_v35 = vld [vmem:[%s2172_s13 + $0x8] sm:$0xff] }
  0xc6   : > { %v404_v30 = vpop.permute.xlu1 %403  ;;  %v431_v42 = vpop.permute.xlu0 %430  ;;  %v2279_v29 = vsub.f32 %v544_v24, %v2274_v25  ;;  %1708 = vmatprep.subr.mxu0 %v2274_v25 }
  0xc7   : > { %v411_v34 = vadd.f32 %v1564_v28, %v404_v30  ;;  %vm435_vm0 = vcmp.eq.s32.totalorder %v2203_v37, %v431_v42  ;;  %v2281_v30 = vand.u32 4294901760, %v543_v27  ;;  %1709 = vmatpush3.msra.mxu0 %v2274_v25 }
  0xc9   : > { %v413_v36 = vadd.f32 %v411_v34, %v390_v32  ;;  %v2287_v32 = vand.u32 4294901760, %v2279_v29  ;;  %v2290_v33 = vsub.f32 %v543_v27, %v2281_v30  ;;  %v2292_v34 = vand.u32 4294901760, %v542_v31  ;;  %1710 = vmatprep.subr.mxu0 %v2281_v30 }
  0xca   : > { %v409_v38 = vpop.permute.xlu1 %408  ;;  %1711 = vmatpush3.msra.mxu0 %v2281_v30 }
  0xcb   : > { %v415_v40 = vmax.f32 %v413_v36, 1e-20  ;;  %v412_v41 = vadd.f32 %v1564_v28, %v409_v38  ;;  %v766_v36 = vsub.f32 %v2279_v29, %v2287_v32  ;;  %v2300_v38 = vand.u32 4294901760, %v2290_v33  ;;  %1712 = vmatprep.subr.mxu0 %v2292_v34 }
  0xcc   : > { %1713 = vmatpush3.msra.mxu0 %v2292_v34 }
  0xcd   : > { %v421_v43 = vand.u32 4294967232, %v415_v40  ;;  %v414_v44 = vadd.f32 %v412_v41, %v391_v39  ;;  %v2303_v39 = vsub.f32 %v542_v31, %v2292_v34  ;;  %v2305_v40 = vand.u32 4294901760, %v541_v35  ;;  %v540_v41 = vld [vmem:[%s2172_s13] sm:$0xff]  ;;  %s1558_s13 = sshll.u32 %s2168_s29, 4 }
  0xce   : > { %v434_v48 = vpop.permute.xlu1 %433  ;;  %v767_v42 = vand.u32 4294901760, %v766_v36  ;;  %s323_s16 = scalar_lea.vmem [#allocation5], %s1558_s13 }
  0xcf   : > { %v416_v45 = vmax.f32 %v414_v44, 1e-20  ;;  %v423_v46 = vor.u32 %v421_v43, %v2203_v37  ;;  %vm436_vm2 = vcmp.eq.s32.totalorder %v2203_v37, %v434_v48  ;;  %v773_v43 = vsub.f32 %v2290_v33, %v2300_v38  ;;  %1714 = vmatprep.subr.mxu0 %v2305_v40  ;;  %s1432_s15 = sshll.u32 %s323_s16, 4  ;;  %s2561_s15 = int_to_ptr.vmem [resolvable:$true] %s1432_s15 }
  0xd0   : > { %v2313_v44 = vand.u32 4294901760, %v2303_v39  ;;  %1715 = vmatpush3.msra.mxu0 %v2305_v40  ;;  %1736 = vmatprep.subr.mxu1 %v767_v42  ;;  %s1960_s18 = scalar_lea.vmem %s2561_s15, 256  ;;  %p1967_p7 = scmp.lt.s32.totalorder %s2561_s15, %s1965_s19 }
  0xd1   : > { %v422_v47 = vand.u32 4294967232, %v416_v45  ;;  %v437_v49 = vsel %vm435_vm0, inf, %v423_v46  ;;  %v2316_v45 = vsub.f32 %v541_v35, %v2305_v40  ;;  %v2319_v46 = vand.u32 4294901760, %v540_v41  ;;  %1737 = vmatpush3.msra.mxu1 %v767_v42  ;;  %p1961_p12 = scmp.ne.s32.totalorder %s2561_s15, %s1960_s18  ;;  %p1968_p8 = scmp.lt.s32.totalorder %s1966_s20, %s1960_s18 }
  0xd2   : > { %v440_v50 = vsel %vm439_vm1, %v437_v49, inf  ;;  %v780_v48 = vsub.f32 %v2303_v39, %v2313_v44 }
  0xd3   : > { %v424_v51 = vor.u32 %v422_v47, %v2203_v37  ;;  %441 = vmin.xlane.f32.xlu1 %v440_v50  ;;  %v774_v47 = vand.u32 4294901760, %v773_v43  ;;  %v2328_v50 = vsub.f32 %v540_v41, %v2319_v46  ;;  %1716 = vmatprep.subr.mxu0 %v2319_v46  ;;  %p1962_p4 = pnand %p1961_p12, %p2624_p13  ;;  %p1969_p10 = por %p1968_p8, %p1967_p7 }
  0xd4   : > { %1717 = vmatpush3.msra.mxu0 %v2319_v46 }
  0xd5   : > { %v438_v52 = vsel %vm436_vm2, inf, %v424_v51  ;;  %1738 = vmatprep.subr.mxu1 %v774_v47  ;;  %v781_v51 = vand.u32 4294901760, %v780_v48  ;;  %1758 = vmatprep.subr.mxu0 %v2237_v8  ;;  %p1963_p5 = pneg %p1962_p4 }
  0xd6   : > { %v443_v53 = vsel %vm439_vm1, %v438_v52, inf  ;;  %1739 = vmatpush3.msra.mxu1 %v774_v47 }
  0xd7   : > { %444 = vmin.xlane.f32.xlu0 %v443_v53  ;;  %v2335_v53 = vand.u32 4294901760, %v2328_v50  ;;  %1740 = vmatprep.subr.mxu1 %v781_v51  ;;  %p1970_p0 = pnand %p1969_p10, %p1963_p5 }
  0xd8   : > { %1741 = vmatpush3.msra.mxu1 %v781_v51 }
 0x15c   : > { %v2211_v54 = vpop.xlane.xlu1 %441 }
 0x15d   : > { %vm446_vm3 = vcmp.eq.f32.partialorder %v437_v49, %v2211_v54 }
 0x15e   : > { %v448_v55 = vsel %vm446_vm3, inf, %v437_v49  ;;  %v2325_v49 = vand.u32 4294901760, %v2316_v45 }
 0x15f   : > { %v450_v56 = vsel %vm439_vm1, %v448_v55, inf }
 0x160   : > { %451 = vmin.xlane.f32.xlu0 %v450_v56  ;;  %v2215_v57 = vpop.xlane.xlu0 %444  ;;  %v794_v56 = vsub.f32 %v2328_v50, %v2335_v53 }
 0x161   : > { %vm447_vm4 = vcmp.eq.f32.partialorder %v438_v52, %v2215_v57 }
 0x162   : > { %v449_v58 = vsel %vm447_vm4, inf, %v438_v52  ;;  %v787_v52 = vsub.f32 %v2316_v45, %v2325_v49 }
 0x163   : > { %v453_v59 = vsel %vm439_vm1, %v449_v58, inf }
 0x164   : > { %454 = vmin.xlane.f32.xlu1 %v453_v59  ;;  %v485_v59 = vand.u32 63, %v2215_v57 }
 0x1e9   : > { %v2219_v60 = vpop.xlane.xlu0 %451 }
 0x1ea   : > { %vm456_vm5 = vcmp.eq.f32.partialorder %v448_v55, %v2219_v60 }
 0x1eb   : > { %v458_v61 = vsel %vm456_vm5, inf, %v448_v55  ;;  %v788_v55 = vand.u32 4294901760, %v787_v52 }
 0x1ec   : > { %v460_v62 = vsel %vm439_vm1, %v458_v61, inf }
 0x1ed   : > { %v2223_v63 = vpop.xlane.xlu1 %454  ;;  %461 = vmin.xlane.f32.xlu0 %v460_v62  ;;  %1742 = vmatprep.subr.mxu1 %v788_v55  ;;  %v486_v62 = vand.u32 63, %v2219_v60  ;;  %v2032_v60 = vmov 0.0  }
 0x1ee   : > { %vm457_vm6 = vcmp.eq.f32.partialorder %v449_v58, %v2223_v63  ;;  %1743 = vmatpush3.msra.mxu1 %v788_v55 }
 0x1ef   : > { %v459_v0 = vsel %vm457_vm6, inf, %v449_v58  ;;  %v795_v58 = vand.u32 4294901760, %v794_v56 }
 0x1f0   : > { %v463_v1 = vsel %vm439_vm1, %v459_v0, inf }
 0x1f1   : > { %464 = vmin.xlane.f32.xlu1 %v463_v1  ;;  %1744 = vmatprep.subr.mxu1 %v795_v58 }
 0x1f2   : > { %1745 = vmatpush3.msra.mxu1 %v795_v58 }
 0x1f3   : > { %1786 = vmatprep.subr.mxu1 %v2230_v5 }
 0x276   : > { %v2266_v20 = vpop.xlane.xlu0 %461 }
 0x277   : > { %vm466_vm7 = vcmp.eq.f32.partialorder %v458_v61, %v2266_v20  ;;  %v488_v1 = vand.u32 63, %v2266_v20 }
 0x278   : > { %v468_v21 = vsel %vm466_vm7, inf, %v458_v61  ;;  %v484_v61 = vand.u32 63, %v2211_v54 }
 0x279   : > { %v470_v22 = vsel %vm439_vm1, %v468_v21, inf }
 0x27a   : > { %v2270_v23 = vpop.xlane.xlu1 %464  ;;  %471 = vmin.xlane.f32.xlu0 %v470_v22 }
 0x27b   : > { %vm467_vm8 = vcmp.eq.f32.partialorder %v459_v0, %v2270_v23  ;;  %v489_v2 = vand.u32 63, %v2270_v23 }
 0x27c   : > { %v469_v26 = vsel %vm467_vm8, inf, %v459_v0  ;;  %v487_v0 = vand.u32 63, %v2223_v63 }
 0x27d   : > { %v473_v28 = vsel %vm439_vm1, %v469_v26, inf }
 0x27e   : > { %474 = vmin.xlane.f32.xlu1 %v473_v28 }
 0x28f   : > { %496 = vperm.xlu1 %1930, %v485_v59  }
 0x290   : > { %493 = vperm.xlu0 %1931, %v484_v61  }
 0x293   : > { %499 = vperm.xlu1 %1930, %v486_v62  }
 0x294   : > { %502 = vperm.xlu0 %1931, %v487_v0  }
 0x297   : > { %505 = vperm.xlu1 %1930, %v488_v1  }
 0x298   : > { %508 = vperm.xlu0 %1931, %v489_v2  }
 0x303   : > { %v472_v57 = vpop.xlane.xlu0 %471 }
 0x304   : > { %v490_v54 = vand.u32 63, %v472_v57 }
 0x306   : > { %511 = vperm.xlu1 %1930, %v490_v54  }
 0x307   : > { %v475_v3 = vpop.xlane.xlu1 %474 }
 0x308   : > { %v491_v4 = vand.u32 63, %v475_v3 }
 0x30a   : > { %514 = vperm.xlu0 %1931, %v491_v4  }
 0x30b   : > { %v497_v14 = vpop.permute.xlu1 %496  ;;  %v494_v15 = vpop.permute.xlu0 %493 }
 0x30c   : > { %vm517_vm9 = vcmp.eq.s32.totalorder %v2203_v37, %v497_v14  ;;  %vm516_vm10 = vcmp.eq.s32.totalorder %v2203_v37, %v494_v15 }
 0x30d   : > { %v2350_v63 = vsel %vm517_vm9, 1.0, %v2032_v60  ;;  %v2353_v16 = vsel %vm516_vm10, 1.0, %v2032_v60 }
 0x30e   : > { %v552_v17 = vsel %vm439_vm1, %v2350_v63, 0  ;;  %1746 = vmatprep.mubr.msk.f32.mxu1 %vm439_vm1, %v2353_v16  ;;  %v549_v18 = vsel %vm439_vm1, %v2353_v16, 0 }
 0x30f   : > { %v2361_v19 = vsub.f32 %v552_v17, %v552_v17  ;;  %v500_v20 = vpop.permute.xlu1 %499  ;;  %1747 = vmatmul.mubr.msk.f32.vlgmr.msra.gmra.mxu1 %vm439_vm1, %v2350_v63  ;;  %v503_v21 = vpop.permute.xlu0 %502  ;;  %v2365_v22 = vsub.f32 %v549_v18, %v549_v18 }
 0x310   : > { %vm518_vm11 = vcmp.eq.s32.totalorder %v2203_v37, %v500_v20  ;;  %vm519_vm12 = vcmp.eq.s32.totalorder %v2203_v37, %v503_v21  ;;  %1787 = vmatpush3.msra.mxu1 %v2230_v5 }
 0x311   : > { %v2371_v23 = vsel %vm518_vm11, 1.0, %v2032_v60  ;;  %v2374_v24 = vsel %vm519_vm12, 1.0, %v2032_v60  ;;  %v647_v26 = vand.u32 4294901760, %v2365_v22  ;;  %v657_v27 = vand.u32 4294901760, %v2361_v19  ;;  %1788 = vmatprep.subr.mxu1 %v2232_v6 }
 0x312   : > { %v555_v28 = vsel %vm439_vm1, %v2371_v23, 0  ;;  %v558_v31 = vsel %vm439_vm1, %v2374_v24, 0  ;;  %1749 = vmatprep.mubr.msk.f32.mxu1 %vm439_vm1, %v2371_v23  ;;  %1789 = vmatpush3.msra.mxu1 %v2232_v6 }
 0x313   : > { %v2386_v35 = vsub.f32 %v555_v28, %v555_v28  ;;  %v2388_v36 = vsub.f32 %v558_v31, %v558_v31  ;;  %v506_v41 = vpop.permute.xlu1 %505  ;;  %1750 = vmatmul.mubr.msk.f32.gmra.mxu1 %vm439_vm1, %v2374_v24  ;;  %v509_v42 = vpop.permute.xlu0 %508  ;;  %v648_v43 = vsub.f32 %v2365_v22, %v647_v26  ;;  %v658_v47 = vsub.f32 %v2361_v19, %v657_v27 }
 0x314   : > { %vm520_vm13 = vcmp.eq.s32.totalorder %v2203_v37, %v506_v41  ;;  %vm521_vm14 = vcmp.eq.s32.totalorder %v2203_v37, %v509_v42  ;;  %1790 = vmatprep.subr.mxu1 %v2234_v7 }
 0x315   : > { %v2402_v48 = vsel %vm520_vm13, 1.0, %v2032_v60  ;;  %v2405_v51 = vsel %vm521_vm14, 1.0, %v2032_v60  ;;  %v649_v52 = vand.u32 4294901760, %v648_v43  ;;  %v659_v55 = vand.u32 4294901760, %v658_v47  ;;  %1791 = vmatpush3.msra.mxu1 %v2234_v7 }
 0x316   : > { %v561_v56 = vsel %vm439_vm1, %v2402_v48, 0  ;;  %v564_v58 = vsel %vm439_vm1, %v2405_v51, 0  ;;  %1752 = vmatprep.mubr.msk.f32.mxu1 %vm439_vm1, %v2402_v48  ;;  %v667_v59 = vand.u32 4294901760, %v2386_v35  ;;  %v677_v61 = vand.u32 4294901760, %v2388_v36  ;;  %1792 = vmatprep.subr.mxu1 %v2274_v25 }
 0x317   : > { %v2417_v62 = vsub.f32 %v561_v56, %v561_v56  ;;  %v2419_v0 = vsub.f32 %v564_v58, %v564_v58  ;;  %1718 = vmatprep.mubr.f32.mxu0 %v649_v52  ;;  %1753 = vmatmul.mubr.msk.f32.gmra.mxu1 %vm439_vm1, %v2405_v51 }
 0x318   : > { %1719 = vmatmul.mubr.f32.vlgmr.msra.gmra.mxu0 %v659_v55  ;;  %v668_v1 = vsub.f32 %v2386_v35, %v667_v59  ;;  %v678_v2 = vsub.f32 %v2388_v36, %v677_v61  ;;  %1793 = vmatpush3.msra.mxu1 %v2274_v25 }
 0x319   : > { %v687_v57 = vand.u32 4294901760, %v2417_v62  ;;  %v697_v54 = vand.u32 4294901760, %v2419_v0  ;;  %1794 = vmatprep.subr.mxu1 %v2281_v30  ;;  %1759 = vmatpush3.msra.mxu0 %v2237_v8 }
 0x31a   : > { %v669_v3 = vand.u32 4294901760, %v668_v1  ;;  %v679_v4 = vand.u32 4294901760, %v678_v2  ;;  %1795 = vmatpush3.msra.mxu1 %v2281_v30  ;;  %1760 = vmatprep.subr.mxu0 %v2240_v9 }
 0x31b   : > { %v688_v14 = vsub.f32 %v2417_v62, %v687_v57  ;;  %v698_v15 = vsub.f32 %v2419_v0, %v697_v54  ;;  %1796 = vmatprep.subr.mxu1 %v2292_v34  ;;  %1761 = vmatpush3.msra.mxu0 %v2240_v9 }
 0x31c   : > { %1721 = vmatprep.mubr.f32.mxu0 %v669_v3  ;;  %1797 = vmatpush3.msra.mxu1 %v2292_v34 }
 0x31d   : > { %1722 = vmatmul.mubr.f32.gmra.mxu0 %v679_v4  ;;  %v689_v8 = vand.u32 4294901760, %v688_v14  ;;  %v699_v17 = vand.u32 4294901760, %v698_v15  ;;  %1762 = vmatprep.subr.mxu0 %v2243_v10 }
 0x31e   : > { %1798 = vmatprep.subr.mxu1 %v2305_v40  ;;  %1763 = vmatpush3.msra.mxu0 %v2243_v10 }
 0x31f   : > { %1724 = vmatprep.mubr.f32.mxu0 %v689_v8  ;;  %1799 = vmatpush3.msra.mxu1 %v2305_v40 }
 0x320   : > { %1764 = vmatprep.subr.mxu0 %v2279_v29  ;;  %1800 = vmatprep.subr.mxu1 %v2319_v46 }
 0x321   : > { %1725 = vmatmul.mubr.f32.gmra.mxu0 %v699_v17  ;;  %1801 = vmatpush3.msra.mxu1 %v2319_v46 }
 0x322   : > { %1765 = vmatpush3.msra.mxu0 %v2279_v29  ;;  %1842 = vmatprep.subr.mxu1 %v2230_v5 }
 0x323   : > { %1766 = vmatprep.subr.mxu0 %v2290_v33 }
 0x324   : > { %1767 = vmatpush3.msra.mxu0 %v2290_v33 }
 0x325   : > { %1768 = vmatprep.subr.mxu0 %v2303_v39 }
 0x326   : > { %1769 = vmatpush3.msra.mxu0 %v2303_v39 }
 0x327   : > { %1770 = vmatprep.subr.mxu0 %v2316_v45 }
 0x328   : > { %1771 = vmatpush3.msra.mxu0 %v2316_v45 }
 0x329   : > { %1772 = vmatprep.subr.mxu0 %v2328_v50 }
 0x32a   : > { %1773 = vmatpush3.msra.mxu0 %v2328_v50 }
 0x32b   : > { %1814 = vmatprep.subr.mxu0 %v2248_v11 }
 0x381   : > { %v512_v9 = vpop.permute.xlu1 %511 }
 0x382   : > { %vm522_vm15 = vcmp.eq.s32.totalorder %v2203_v37, %v512_v9 }
 0x383   : > { %v2465_v10 = vsel %vm522_vm15, 1.0, %v2032_v60 }
 0x384   : > { %v567_v29 = vsel %vm439_vm1, %v2465_v10, 0  ;;  %1755 = vmatprep.mubr.msk.f32.mxu1 %vm439_vm1, %v2465_v10 }
 0x385   : > { %v706_v33 = vsub.f32 %v567_v29, %v567_v29  ;;  %v515_v39 = vpop.permute.xlu0 %514 }
 0x386   : > { %vm523_vm0 = vcmp.eq.s32.totalorder %v2203_v37, %v515_v39 }
 0x387   : > { %v2473_v45 = vsel %vm523_vm0, 1.0, %v2032_v60  ;;  %v707_v50 = vand.u32 4294901760, %v706_v33 }
 0x388   : > { %v570_v18 = vsel %vm439_vm1, %v2473_v45, 0  ;;  %1756 = vmatmul.mubr.msk.f32.gmra.mxu1 %vm439_vm1, %v2473_v45 }
 0x389   : > { %v716_v20 = vsub.f32 %v570_v18, %v570_v18  ;;  %1802 = vmatprep.mubr.f32.mxu1 %v647_v26  ;;  %v708_v21 = vsub.f32 %v706_v33, %v707_v50 }
 0x38b   : > { %v709_v28 = vand.u32 4294901760, %v708_v21  ;;  %v717_v31 = vand.u32 4294901760, %v716_v20 }
 0x38c   : > { %1803 = vmatmul.mubr.f32.vlgmr.msra.gmra.mxu1 %v657_v27 }
 0x38d   : > { %1727 = vmatprep.mubr.f32.mxu0 %v709_v28  ;;  %1805 = vmatprep.mubr.f32.mxu1 %v667_v59  ;;  %v718_v37 = vsub.f32 %v716_v20, %v717_v31 }
 0x38e   : > { %1843 = vmatpush3.msra.mxu1 %v2230_v5 }
 0x38f   : > { %1844 = vmatprep.subr.mxu1 %v2232_v6  ;;  %v719_v60 = vand.u32 4294901760, %v718_v37 }
 0x390   : > { %1845 = vmatpush3.msra.mxu1 %v2232_v6 }
 0x391   : > { %1806 = vmatmul.mubr.f32.gmra.mxu1 %v677_v61  ;;  %1846 = vmatprep.subr.mxu1 %v2234_v7 }
 0x392   : > { %1728 = vmatmul.mubr.f32.gmra.mxu0 %v719_v60  ;;  %1808 = vmatprep.mubr.f32.mxu1 %v687_v57 }
 0x393   : > { %1847 = vmatpush3.msra.mxu1 %v2234_v7  ;;  %1774 = vmatprep.mubr.f32.mxu0 %v2365_v22 }
 0x394   : > { %1848 = vmatprep.subr.mxu1 %v2274_v25 }
 0x395   : > { %1849 = vmatpush3.msra.mxu1 %v2274_v25 }
 0x396   : > { %1809 = vmatmul.mubr.f32.gmra.mxu1 %v697_v54  ;;  %1850 = vmatprep.subr.mxu1 %v2281_v30 }
 0x397   : > { %1775 = vmatmul.mubr.f32.vlgmr.msra.gmra.mxu0 %v2361_v19  ;;  %1811 = vmatprep.mubr.f32.mxu1 %v707_v50 }
 0x398   : > { %1815 = vmatpush3.msra.mxu0 %v2248_v11  ;;  %1851 = vmatpush3.msra.mxu1 %v2281_v30 }
 0x399   : > { %1777 = vmatprep.mubr.f32.mxu0 %v2386_v35  ;;  %1816 = vmatprep.subr.mxu0 %v2251_v12 }
 0x39a   : > { %1852 = vmatprep.subr.mxu1 %v2292_v34  ;;  %1817 = vmatpush3.msra.mxu0 %v2251_v12 }
 0x39b   : > { %1853 = vmatpush3.msra.mxu1 %v2292_v34  ;;  %1818 = vmatprep.subr.mxu0 %v2254_v13 }
 0x39c   : > { %1812 = vmatmul.mubr.f32.gmra.mxu1 %v717_v31  ;;  %1854 = vmatprep.subr.mxu1 %v2305_v40 }
 0x39d   : > { %1778 = vmatmul.mubr.f32.gmra.mxu0 %v2388_v36  ;;  %1855 = vmatpush3.msra.mxu1 %v2305_v40 }
 0x39e   : > { %1819 = vmatpush3.msra.mxu0 %v2254_v13  ;;  %1858 = vmatprep.mubr.msk.f32.mxu1 %vm439_vm1, %v2353_v16 }
 0x39f   : > { %1780 = vmatprep.mubr.f32.mxu0 %v2417_v62  ;;  %1820 = vmatprep.subr.mxu0 %v2287_v32 }
 0x3a0   : > { %1856 = vmatprep.subr.mxu1 %v2319_v46  ;;  %1821 = vmatpush3.msra.mxu0 %v2287_v32 }
 0x3a1   : > { %1857 = vmatpush3.msra.mxu1 %v2319_v46  ;;  %1822 = vmatprep.subr.mxu0 %v2300_v38 }
 0x3a2   : > { %1859 = vmatmul.mubr.msk.f32.vlgmr.msra.gmra.mxu1 %vm439_vm1, %v2350_v63  ;;  %1781 = vmatmul.mubr.f32.gmra.mxu0 %v2419_v0 }
 0x3a3   : > { %1823 = vmatpush3.msra.mxu0 %v2300_v38  ;;  %1861 = vmatprep.mubr.msk.f32.mxu1 %vm439_vm1, %v2371_v23 }
 0x3a4   : > { %1783 = vmatprep.mubr.f32.mxu0 %v706_v33  ;;  %1824 = vmatprep.subr.mxu0 %v2313_v44 }
 0x3a5   : > { %1825 = vmatpush3.msra.mxu0 %v2313_v44 }
 0x3a6   : > { %1826 = vmatprep.subr.mxu0 %v2325_v49  ;;  %1862 = vmatmul.mubr.msk.f32.gmra.mxu1 %vm439_vm1, %v2374_v24 }
 0x3a7   : > { %1784 = vmatmul.mubr.f32.gmra.mxu0 %v716_v20  ;;  %1864 = vmatprep.mubr.msk.f32.mxu1 %vm439_vm1, %v2402_v48 }
 0x3a8   : > { %1827 = vmatpush3.msra.mxu0 %v2325_v49  ;;  %1830 = vmatprep.mubr.msk.f32.mxu0 %vm439_vm1, %v2353_v16 }
 0x3a9   : > { %1828 = vmatprep.subr.mxu0 %v2335_v53 }
 0x3aa   : > { %1829 = vmatpush3.msra.mxu0 %v2335_v53  ;;  %1865 = vmatmul.mubr.msk.f32.gmra.mxu1 %vm439_vm1, %v2405_v51 }
 0x3ab   : > { %1831 = vmatmul.mubr.msk.f32.vlgmr.msra.gmra.mxu0 %vm439_vm1, %v2350_v63  ;;  %1867 = vmatprep.mubr.msk.f32.mxu1 %vm439_vm1, %v2465_v10 }
 0x3ac   : > { %1833 = vmatprep.mubr.msk.f32.mxu0 %vm439_vm1, %v2371_v23 }
 0x3ae   : > { %1868 = vmatmul.mubr.msk.f32.gmra.mxu1 %vm439_vm1, %v2473_v45 }
 0x3af   : > { %1834 = vmatmul.mubr.msk.f32.gmra.mxu0 %vm439_vm1, %v2374_v24 }
 0x3b0   : > { %1836 = vmatprep.mubr.msk.f32.mxu0 %vm439_vm1, %v2402_v48 }
 0x3b3   : > { %1837 = vmatmul.mubr.msk.f32.gmra.mxu0 %vm439_vm1, %v2405_v51 }
 0x3b4   : > { %1839 = vmatprep.mubr.msk.f32.mxu0 %vm439_vm1, %v2465_v10 }
 0x3b7   : > { %1840 = vmatmul.mubr.msk.f32.gmra.mxu0 %vm439_vm1, %v2473_v45 }
 0x3cf   : > { %v1748_v5 = vpop.f32.mrf.mxu1 }
 0x3d1   : > { %v832_v6 = vpop.f32.mrf.mxu1 }
 0x3d3   : > { %v1751_v7 = vpop.f32.mrf.mxu1 }
 0x3d5   : > { %v844_v12 = vpop.f32.mrf.mxu1 }
 0x3d7   : > { %v1754_v25 = vpop.f32.mrf.mxu1 }
 0x3d8   : > { %v1720_v11 = vpop.f32.mrf.mxu0 }
 0x3d9   : > { %v856_v32 = vpop.f32.mrf.mxu1  ;;  %v839_v59 = vadd.f32 %v1748_v5, %v1720_v11 }
 0x3da   : > { %v651_v13 = vpop.f32.mrf.mxu0 }
 0x3db   : > { %v833_v2 = vadd.f32 %v832_v6, %v651_v13 }
 0x3dd   : > { %v1723_v30 = vpop.f32.mrf.mxu0 }
 0x3de   : > { %v851_v56 = vadd.f32 %v1751_v7, %v1723_v30 }
 0x3df   : > { %v671_v34 = vpop.f32.mrf.mxu0 }
 0x3e0   : > { %v845_v61 = vadd.f32 %v844_v12, %v671_v34 }
 0x3e1   : > { %v1726_v44 = vpop.f32.mrf.mxu0 }
 0x3e2   : > { %v863_v57 = vadd.f32 %v1754_v25, %v1726_v44 }
 0x3e3   : > { %v691_v53 = vpop.f32.mrf.mxu0 }
 0x3e4   : > { %v857_v14 = vadd.f32 %v856_v32, %v691_v53 }
 0x448   : > { %v1757_v38 = vpop.f32.mrf.mxu1 }
 0x44a   : > { %v868_v40 = vpop.f32.mrf.mxu1 }
 0x44c   : > { %v1804_v46 = vpop.f32.mrf.mxu1 }
 0x44e   : > { %v1092_v49 = vpop.f32.mrf.mxu1 }
 0x451   : > { %v1807_v63 = vpop.f32.mrf.mxu1 }
 0x452   : > { %v1729_v16 = vpop.f32.mrf.mxu0 }
 0x453   : > { %v1108_v19 = vpop.f32.mrf.mxu1  ;;  %v875_v9 = vadd.f32 %v1757_v38, %v1729_v16 }
 0x454   : > { %v711_v22 = vpop.f32.mrf.mxu0 }
 0x455   : > { %v869_v18 = vadd.f32 %v868_v40, %v711_v22 }
 0x456   : > { %v1810_v23 = vpop.f32.mrf.mxu1 }
 0x457   : > { %v1776_v24 = vpop.f32.mrf.mxu0 }
 0x458   : > { %v1124_v26 = vpop.f32.mrf.mxu1  ;;  %v970_v54 = vadd.f32 %v1776_v24, %v839_v59 }
 0x459   : > { %v962_v27 = vpop.f32.mrf.mxu0 }
 0x45a   : > { %v963_v15 = vadd.f32 %v962_v27, %v833_v2  ;;  %v1101_v39 = vadd.f32 %v1804_v46, %v970_v54 }
 0x45c   : > { %v1813_v35 = vpop.f32.mrf.mxu1  ;;  %v1093_v31 = vadd.f32 %v1092_v49, %v963_v15 }
 0x45d   : > { %v1779_v36 = vpop.f32.mrf.mxu0 }
 0x45e   : > { %v1140_v41 = vpop.f32.mrf.mxu1  ;;  %v984_v62 = vadd.f32 %v1779_v36, %v851_v56 }
 0x45f   : > { %v976_v42 = vpop.f32.mrf.mxu0 }
 0x460   : > { %v977_v3 = vadd.f32 %v976_v42, %v845_v61  ;;  %v1117_v17 = vadd.f32 %v1807_v63, %v984_v62 }
 0x462   : > { %v1860_v43 = vpop.f32.mrf.mxu1  ;;  %v1782_v47 = vpop.f32.mrf.mxu0  ;;  %v1109_v50 = vadd.f32 %v1108_v19, %v977_v3 }
 0x463   : > { %v998_v8 = vadd.f32 %v1782_v47, %v863_v57 }
 0x464   : > { %v1364_v48 = vpop.f32.mrf.mxu1  ;;  %v990_v51 = vpop.f32.mrf.mxu0 }
 0x465   : > { %v991_v33 = vadd.f32 %v990_v51, %v857_v14  ;;  %v1133_v60 = vadd.f32 %v1810_v23, %v998_v8 }
 0x466   : > { %v1863_v52 = vpop.f32.mrf.mxu1 }
 0x467   : > { %v1785_v55 = vpop.f32.mrf.mxu0  ;;  %v1125_v25 = vadd.f32 %v1124_v26, %v991_v33 }
 0x468   : > { %v1376_v0 = vpop.f32.mrf.mxu1  ;;  %v1012_v20 = vadd.f32 %v1785_v55, %v875_v9 }
 0x469   : > { %v1004_v58 = vpop.f32.mrf.mxu0 }
 0x46a   : > { %v1866_v10 = vpop.f32.mrf.mxu1  ;;  %v1005_v5 = vadd.f32 %v1004_v58, %v869_v18  ;;  %v1149_v32 = vadd.f32 %v1813_v35, %v1012_v20 }
 0x46b   : > { %v1832_v1 = vpop.f32.mrf.mxu0 }
 0x46c   : > { %v1250_v28 = vadd.f32 %v1832_v1, %v1101_v39  ;;  %v1388_v6 = vpop.f32.mrf.mxu1  ;;  %v1141_v49 = vadd.f32 %v1140_v41, %v1005_v5 }
 0x46d   : > { %v1243_v4 = vpop.f32.mrf.mxu0 }
 0x46e   : > { %v1244_v11 = vadd.f32 %v1243_v4, %v1093_v31  ;;  %v1371_v34 = vadd.f32 %v1860_v43, %v1250_v28  ;;  %v1869_v46 = vpop.f32.mrf.mxu1 }
 0x46f   : > { %v1835_v29 = vpop.f32.mrf.mxu0 }
 0x470   : > { %v1262_v45 = vadd.f32 %v1835_v29, %v1117_v17  ;;  %v1365_v63 = vadd.f32 %v1364_v48, %v1244_v11  ;;  %v1400_v36 = vpop.f32.mrf.mxu1 }
 0x471   : > { %v1255_v21 = vpop.f32.mrf.mxu0 }
 0x472   : > { %v1256_v37 = vadd.f32 %v1255_v21, %v1109_v50  ;;  %v1383_v12 = vadd.f32 %v1863_v52, %v1262_v45 }
 0x473   : > { %v1838_v7 = vpop.f32.mrf.mxu0 }
 0x474   : > { %v1274_v13 = vadd.f32 %v1838_v7, %v1133_v60  ;;  %v1377_v38 = vadd.f32 %v1376_v0, %v1256_v37  ;;  %v1411_v16 = vmax.f32 %v1371_v34, %v1383_v12 }
 0x475   : > { %v1267_v30 = vpop.f32.mrf.mxu0 }
 0x476   : > { %v1395_v44 = vadd.f32 %v1866_v10, %v1274_v13  ;;  %v1268_v40 = vadd.f32 %v1267_v30, %v1125_v25  ;;  %v1410_v24 = vmax.f32 %v1365_v63, %v1377_v38 }
 0x477   : > { %v1841_v53 = vpop.f32.mrf.mxu0 }
 0x478   : > { %v1389_v19 = vadd.f32 %v1388_v6, %v1268_v40  ;;  %v1286_v22 = vadd.f32 %v1841_v53, %v1149_v32  ;;  %v1413_v26 = vmax.f32 %v1411_v16, %v1395_v44 }
 0x479   : > { %v1279_v23 = vpop.f32.mrf.mxu0 }
 0x47a   : > { %v1407_v27 = vadd.f32 %v1869_v46, %v1286_v22  ;;  %v1280_v35 = vadd.f32 %v1279_v23, %v1141_v49  ;;  %v1412_v42 = vmax.f32 %v1410_v24, %v1389_v19 }
 0x47c   : > { %v1415_v43 = vmax.f32 %v1413_v26, %v1407_v27  ;;  %v1401_v41 = vadd.f32 %v1400_v36, %v1280_v35 }
 0x47e   : > { %1417 = vst [vmem:[%s323_s16 + $0x8] sm:$0xff] %v1415_v43  ;;  %v1414_v47 = vmax.f32 %v1412_v42, %v1401_v41 }
 0x480   : > { %1416 = vst [vmem:[%s323_s16] sm:$0xff] %v1414_v47 }
 0x481   : > { %1973 = shalt.err (!%p1970_p0)
}
 0x482   : > { %s1974_s11 = scalar_lea.hbm %s2566_s12, 256  ;;  %s1978_s13 = scalar_lea.hbm %s2615_s6, 512 }
 0x483   : > { %p1975_p2 = scmp.ne.s32.totalorder %s2566_s12, %s1974_s11  ;;  %p1979_p3 = scmp.lt.s32.totalorder %s2566_s12, %s2615_s6 }
 0x484   : > { %p1980_p6 = scmp.lt.s32.totalorder %s1978_s13, %s1974_s11 }
 0x485   : > { %p1976_p9 = pnand %p1975_p2, %p2624_p13 }
 0x486   : > { %p1981_p11 = por %p1980_p6, %p1979_p3 }
 0x487   : > { %p1977_p1 = pneg %p1976_p9 }
 0x489   : > { %p1982_p12 = pnand %p1981_p11, %p1977_p1 }
 0x48b   : > { %1985 = shalt.err (!%p1982_p12)
}
 0x48c   : > { %s2034_s26 = smov 128   ;;  %s2035_s28 = smov 8  }
 0x48d   : > { %1872 = dma.vmem_to_hbm [thread:$0]  (%p2624_p13), %s2561_s15, 256, %s2566_s12, %s1419_s7, %s2034_s26, %s2034_s26, %s2035_s28  }
 0x48e PF: > { %s1447_s18 = sand.u32 1, %s2012_s21   ;;  %p2625_p4 = scmp.ne.s32.totalorder %s2621_s10, 0 }
 0x48f   : > { %p2626_p5 = scmp.ge.s32.totalorder %s2024_s24, 2  ;;  %s1448_s25 = scalar_lea.sflag [#allocation4], %s1447_s18 }
 0x491   : > { %p1879_p7 = pnand %p2626_p5, %p2625_p4 }
 0x493   : > { %p1880_p8 = pneg %p1879_p7 }
 0x495   : > { %2007 = dma.done.wait (%p1880_p8), %s1448_s25, 256  }
 0x496   : > { %2009 = vsyncadd (%p1880_p8), %s1448_s25, 4294967040  ;;  %p19_p10 = scmp.ge.s32.totalorder %s2096_s27, 4   ;;  %s2627_s21 = smov %s2016_s22 }
 0x497   : > { %s2628_s22 = smov %s2020_s23  ;;  %s2629_s23 = smov %s2108_s30 }
 0x498   : > { %s2630_s24 = smov %s2096_s27  ;;  %21 = sbr.rel (!%p19_p10) target bundleno = 5 (0x5), region = 101 }
 0x49d   :  { %1453 = vsyncpa [#allocation3], 1 }
 0x49e   :  { %1455 = vsyncpa [#allocation3 + $0x1], 1 }
 0x49f   :  { %1456 = vsyncpa [#allocation4], 1 }
 0x4a0   :  { %1458 = vsyncpa [#allocation4 + $0x1], 1 }

</bundles_post_ra>
